<compile_context>
chip_gen: v5e
topology: v5e:2x2
jax: 0.10.0
libtpu: 0.0.40
codegen_flags: <defaults>
</compile_context>

<pallas_src>
import jax
import jax.numpy as jnp
from jax.experimental import pallas as pl
from jax.experimental.pallas import tpu as pltpu


def _round_up(v, m):
    return (v + m - 1) // m * m


# -----------------------------------------------------------------------------
# Kernels
# -----------------------------------------------------------------------------
def _linear_kernel_single_k(x_ref, w_ref, b_ref, o_ref):
    # Whole reduction dim in one tile: no accumulator, no pl.when predication.
    o_ref[...] = (
        jnp.dot(x_ref[...], w_ref[...], preferred_element_type=jnp.float32)
        + b_ref[...]
    ).astype(o_ref.dtype)


def _linear_kernel_multi_k(x_ref, w_ref, b_ref, o_ref):
    # o_ref block index is (i, j) for every k -> resident across the reduction
    # axis; accumulate into it directly (f32 output), no VMEM scratch needed.
    k = pl.program_id(2)

    @pl.when(k == 0)
    def _():
        o_ref[...] = jnp.broadcast_to(b_ref[...], o_ref.shape).astype(o_ref.dtype)

    o_ref[...] += jnp.dot(
        x_ref[...], w_ref[...], preferred_element_type=jnp.float32
    )


# -----------------------------------------------------------------------------
# Wrapper / factory
# -----------------------------------------------------------------------------
def make_linear_classifier(weight, bias, *, tn_hint=1024, tk_hint=1024,
                           operand_dtype=jnp.bfloat16):
    """Build a jitted forward fn for nn.Linear(input_size, num_classes).

    weight: [C, D] float32 (PyTorch layout: out_features x in_features)
    bias:   [C]    float32
    Returns forward(x: [B, D] f32) -> [B, C] f32  ==  x @ weight.T + bias
    """
    C, D = weight.shape
    assert bias.shape == (C,)

    # Lane-dense output tiles (multiple of 128); K tiles multiple of 128.
    tn = min(tn_hint, _round_up(C, 128))
    tk = min(tk_hint, _round_up(D, 128))
    N = _round_up(C, tn)
    K = _round_up(D, tk)

    # One-time parameter layout plumbing (hoisted out of the per-call hot path):
    # transpose to [K, N] MXU orientation, zero-pad (K-pad contributes 0 to the
    # dot), cast the matmul operand to bf16; bias stays f32.
    w_p = jnp.pad(weight.T, ((0, K - D), (0, N - C))).astype(operand_dtype)
    b_p = jnp.pad(bias.astype(jnp.float32), (0, N - C)).reshape(1, N)
    w_p = jax.block_until_ready(w_p)
    b_p = jax.block_until_ready(b_p)

    # Per-generation VMEM budget (v5e/v6e: 128 MiB, v7x: 64 MiB physical).
    try:
        vmem_cap = pltpu.get_tpu_info().vmem_capacity_bytes
    except Exception:  # query unavailable -> conservative default
        vmem_cap = 64 * 1024 * 1024
    vmem_limit = min((vmem_cap * 3) // 4, 96 * 1024 * 1024)

    single_k = (K == tk)

    def _pick_tm(B):
        # Minimize batch-padding overshoot; prefer bigger tiles on ties.
        b8 = _round_up(B, 8)
        if b8 <= 64:
            return b8
        return min((64, 128, 256, 512),
                   key=lambda t: (_round_up(B, t) - B, -t))

    def forward(x):
        B, D2 = x.shape
        assert D2 == D
        tm = _pick_tm(B)
        M = _round_up(B, tm)

        x_p = x
        if M != B or K != D:
            x_p = jnp.pad(x, ((0, M - B), (0, K - D)))
        x_p = x_p.astype(operand_dtype)

        gm, gn = M // tm, N // tn
        itemsize = jnp.dtype(operand_dtype).itemsize
        cost = pl.CostEstimate(
            flops=2 * M * K * N,
            transcendentals=0,
            bytes_accessed=(itemsize * M * K * gn      # x re-read per j
                            + itemsize * K * N * gm    # W^T re-read per i
                            + 4 * M * N),              # f32 output
        )

        if single_k:
            out = pl.pallas_call(
                _linear_kernel_single_k,
                out_shape=jax.ShapeDtypeStruct((M, N), jnp.float32),
                grid_spec=pltpu.PrefetchScalarGridSpec(
                    num_scalar_prefetch=0,
                    grid=(gm, gn),
                    in_specs=[
                        pl.BlockSpec((tm, K), lambda i, j: (i, 0)),   # x tile
                        pl.BlockSpec((K, tn), lambda i, j: (0, j)),   # W^T tile
                        pl.BlockSpec((1, tn), lambda i, j: (0, j)),   # bias tile
                    ],
                    out_specs=pl.BlockSpec((tm, tn), lambda i, j: (i, j)),
                ),
                compiler_params=pltpu.CompilerParams(
                    dimension_semantics=("parallel", "parallel"),
                    vmem_limit_bytes=vmem_limit,
                ),
                cost_estimate=cost,
            )(x_p, w_p, b_p)
        else:
            gk = K // tk
            out = pl.pallas_call(
                _linear_kernel_multi_k,
                out_shape=jax.ShapeDtypeStruct((M, N), jnp.float32),
                grid_spec=pltpu.PrefetchScalarGridSpec(
                    num_scalar_prefetch=0,
                    grid=(gm, gn, gk),
                    in_specs=[
                        pl.BlockSpec((tm, tk), lambda i, j, k: (i, k)),  # x
                        pl.BlockSpec((tk, tn), lambda i, j, k: (k, j)),  # W^T
                        pl.BlockSpec((1, tn), lambda i, j, k: (0, j)),   # bias
                    ],
                    out_specs=pl.BlockSpec((tm, tn), lambda i, j, k: (i, j)),
                ),
                compiler_params=pltpu.CompilerParams(
                    dimension_semantics=("parallel", "parallel", "arbitrary"),
                    vmem_limit_bytes=vmem_limit,
                ),
                cost_estimate=cost,
            )(x_p, w_p, b_p)

        # Skip the (whole-matrix copy) slice when no padding was needed.
        if M == B and N == C:
            return out
        return out[:B, :C]

    return jax.jit(forward)


if __name__ == "__main__":
    # Small shapes consistent with the module: batch=8, input_size=32, num_classes=16.
    B, D, C = 8, 32, 16

    key = jax.random.PRNGKey(0)
    kx, kw, kb = jax.random.split(key, 3)

    x = jax.random.normal(kx, (B, D), dtype=jnp.float32)
    bound = 1.0 / (D ** 0.5)
    weight = jax.random.uniform(kw, (C, D), dtype=jnp.float32, minval=-bound, maxval=bound)
    bias = jax.random.uniform(kb, (C,), dtype=jnp.float32, minval=-bound, maxval=bound)

    model = make_linear_classifier(weight, bias)
    out = jax.block_until_ready(model(x))

    # Reference check in plain JAX (f32). bf16 MXU operands -> loosened tolerance.
    ref = x @ weight.T + bias
    assert out.shape == (B, C)
    assert out.dtype == jnp.float32
    assert jnp.allclose(out, ref, atol=5e-2, rtol=5e-2), "mismatch vs reference"

    print("KERNEL_OK")
</pallas_src>

<mosaic_0001>
module attributes {stable_mosaic.version = 11 : i64} {
  func.func @_linear_kernel_single_k(%arg0: i32, %arg1: i32, %arg2: memref<8x128xbf16, #tpu.memory_space<vmem>>, %arg3: memref<128x128xbf16, #tpu.memory_space<vmem>>, %arg4: memref<1x128xf32, #tpu.memory_space<vmem>>, %arg5: memref<8x128xf32, #tpu.memory_space<vmem>>) attributes {dimension_semantics = [#tpu.dimension_semantics<parallel>, #tpu.dimension_semantics<parallel>], iteration_bounds = array<i64: 1, 1>, scalar_prefetch = 0 : i64, scratch_operands = 0 : i64, tpu.core_type = #tpu.core_type<tc>, window_params = [{transform_indices = @transform_0, window_bounds = array<i64: 8, 128>}, {transform_indices = @transform_1, window_bounds = array<i64: 128, 128>}, {transform_indices = @transform_2, window_bounds = array<i64: 1, 128>}, {transform_indices = @transform_3, window_bounds = array<i64: 8, 128>}]} {
    %c0 = arith.constant 0 : index
    %c0_0 = arith.constant 0 : index
    %0 = vector.load %arg2[%c0, %c0_0] : memref<8x128xbf16, #tpu.memory_space<vmem>>, vector<8x128xbf16>
    %c0_1 = arith.constant 0 : index
    %c0_2 = arith.constant 0 : index
    %1 = vector.load %arg3[%c0_1, %c0_2] : memref<128x128xbf16, #tpu.memory_space<vmem>>, vector<128x128xbf16>
    %cst = arith.constant dense<0.000000e+00> : vector<8x128xf32>
    %2 = tpu.matmul %0, %1, %cst {dimension_numbers = #tpu.dot_dimension_numbers<[1], [0], [0], [1], [0, 0, 1, 1], [], []>} : vector<8x128xbf16>, vector<128x128xbf16>, vector<8x128xf32> -> vector<8x128xf32>
    %c0_3 = arith.constant 0 : index
    %c0_4 = arith.constant 0 : index
    %3 = vector.load %arg4[%c0_3, %c0_4] : memref<1x128xf32, #tpu.memory_space<vmem>>, vector<1x128xf32>
    %4 = vector.broadcast %3 : vector<1x128xf32> to vector<8x128xf32>
    %5 = arith.addf %2, %4 : vector<8x128xf32>
    %c0_5 = arith.constant 0 : index
    %c0_6 = arith.constant 0 : index
    %6 = vector.load %arg5[%c0_5, %c0_6] : memref<8x128xf32, #tpu.memory_space<vmem>>, vector<8x128xf32>
    tpu.vector_store %arg5[%c0_5, %c0_6], %5 {strides = array<i32>} : memref<8x128xf32, #tpu.memory_space<vmem>>, vector<8x128xf32>,
    return
  }
  func.func @transform_0(%arg0: i32, %arg1: i32) -> (i32, i32) {
    %c0_i32 = arith.constant 0 : i32
    %c0_i32_0 = arith.constant 0 : i32
    return %arg0, %c0_i32 : i32, i32
  }
  func.func @transform_1(%arg0: i32, %arg1: i32) -> (i32, i32) {
    %c0_i32 = arith.constant 0 : i32
    %c0_i32_0 = arith.constant 0 : i32
    return %c0_i32, %arg1 : i32, i32
  }
  func.func @transform_2(%arg0: i32, %arg1: i32) -> (i32, i32) {
    %c0_i32 = arith.constant 0 : i32
    %c0_i32_0 = arith.constant 0 : i32
    return %c0_i32, %arg1 : i32, i32
  }
  func.func @transform_3(%arg0: i32, %arg1: i32) -> (i32, i32) {
    %c0_i32 = arith.constant 0 : i32
    return %arg0, %arg1 : i32, i32
  }
}

</mosaic_0001>

<bundles_post_ra>
// kernel: forward.1
= control target key start
LH: loop header
LB: loop body
LE: loop exit
PB: predicated region body
PF: predicated region fallthrough
CT: control target
= control target key end

     0   :  { %8 = vsyncpa [#allocation3], 0  ;;  %s264_s0 = inlined_call_operand.vmem [shape: bf16[8,128], index: 0, kind: input, shape index: {}]   ;;  %s265_s1 = inlined_call_operand.hbm [shape: bf16[128,128], index: 1, kind: input, shape index: {}]   ;;  %s266_s2 = inlined_call_operand.vmem [shape: f32[1,128], index: 2, kind: input, shape index: {}]   ;;  %s267_s3 = inlined_call_operand.hbm [shape: f32[8,128], index: 3, kind: output, shape index: {}]  }
   0x1   :  { %9 = vsyncpa [#allocation4], 0  ;;  %s16_s14 = sshll.u32 %s265_s1, 4  ;;  %s228_s15 = smov [#allocation2]   ;;  %s17_s14 = int_to_ptr.hbm [resolvable:$true] %s16_s14 }
   0x2   :  { %s18_s16 = sshll.u32 %s228_s15, 4  ;;  %s229_s17 = smov 64   ;;  %s19_s16 = int_to_ptr.vmem [resolvable:$true] %s18_s16 }
   0x3   :  { %s230_s18 = smov 4  }
   0x4   :  { %24 = dma.hbm_to_vmem [thread:$0]  %s17_s14, 1024, %s19_s16, [#allocation3], %s229_s17, %s229_s17, %s230_s18  }
   0x5   :  { %224 = dma.done.wait [#allocation3], 1024  }
   0x6   :  { %225 = vsyncadd [#allocation3], 4294966272  ;;  %v170_v0 = vld [vmem:[#allocation2 + $0x38] sm:$0xff]  ;;  %v169_v1 = vld [vmem:[#allocation2 + $0x30] sm:$0xff]  ;;  %s231_s22 = smov [#allocation5]   ;;  %s121_s26 = sshll.u32 %s267_s3, 4  ;;  %s122_s26 = int_to_ptr.hbm [resolvable:$true] %s121_s26 }
   0x7   :  { %100 = vmatpush.bf16.msra.mxu0 %v170_v0  ;;  %v168_v2 = vld [vmem:[#allocation2 + $0x28] sm:$0xff]  ;;  %v167_v3 = vld [vmem:[#allocation2 + $0x20] sm:$0xff]  ;;  %v166_v4 = vld [vmem:[#allocation2 + $0x18] sm:$0xff]  ;;  %s119_s23 = sshll.u32 %s231_s22, 4  ;;  %s120_s23 = int_to_ptr.vmem [resolvable:$true] %s119_s23 }
   0x8   :  { %v165_v5 = vld [vmem:[#allocation2 + $0x10] sm:$0xff]  ;;  %v164_v6 = vld [vmem:[#allocation2 + $0x8] sm:$0xff]  ;;  %v163_v7 = vld [vmem:[#allocation2] sm:$0xff] }
   0x9   :  { %v31_v8 = vld [vmem:[%s264_s0] sm:$0xf] }
   0xa   :  { %v175_v9 = vld [vmem:[%s266_s2] ss:$0 sm:$0xff] }
   0xb   :  { %101 = vmatpush.bf16.msra.mxu0 %v169_v1 }
   0xf   :  { %102 = vmatpush.bf16.msra.mxu0 %v168_v2 }
  0x13   :  { %103 = vmatpush.bf16.msra.mxu0 %v167_v3 }
  0x17   :  { %104 = vmatpush.bf16.msra.mxu0 %v166_v4 }
  0x1b   :  { %105 = vmatpush.bf16.msra.mxu0 %v165_v5 }
  0x1f   :  { %106 = vmatpush.bf16.msra.mxu0 %v164_v6 }
  0x23   :  { %107 = vmatpush.bf16.msra.mxu0 %v163_v7 }
  0x26   :  { %108 = vmatmul.bf16.vlgmr.msra.gmra.mxu0 %v31_v8 }
  0xa3   :  { %v109_v10 = vpop.f32.mrf.mxu0 }
  0xa4   :  { %v110_v11 = vadd.f32 %v175_v9, %v109_v10 }
  0xa6   :  { %113 = vst [vmem:[#allocation5] sm:$0xff] %v110_v11 }
  0xa7   :  { %124 = dma.vmem_to_hbm [thread:$0]  %s120_s23, 128, %s122_s26, [#allocation4]  }
  0xab   :  { %v111_v12 = vpop.f32.mrf.mxu0 }
  0xac   :  { %226 = dma.done.wait [#allocation4], 128  }
  0xad   :  { %227 = vsyncadd [#allocation4], 4294967168 }
  0xae   :  { %129 = vsyncpa [#allocation3], 1 }
  0xaf   :  { %130 = vsyncpa [#allocation4], 1 }

</bundles_post_ra>
